<compile_context>
chip_gen: v7x
topology: tpu7x:2x2x1
jax: 0.10.0
libtpu: 0.0.40
codegen_flags: <defaults>
</compile_context>

<pallas_src>
import jax
import jax.numpy as jnp
from jax.experimental import pallas as pl
from jax.experimental.pallas import tpu as pltpu


# ----------------------------- hyper-parameters ------------------------------
NET_DEPTH = 4
NET_WIDTH = 32
NET_DEPTH_CONDITION = 1
NET_WIDTH_CONDITION = 16
SKIP_INDEX = 2
NUM_RGB_CHANNELS = 3
NUM_DENSITY_CHANNELS = 1
XYZ_DIM = 16
VIEW_DIM = 8
OUT_CHANNELS = NUM_RGB_CHANNELS + NUM_DENSITY_CHANNELS  # fused output slab

BATCH = 2
NUM_SAMPLES = 8
TILE_ROWS = 4096        # rows (lanes) per grid step; multiple of 128
W_PAD_COLS = 32         # packed-weight slab width (max fan-in after splits)


def _round_up(v, m):
    return ((v + m - 1) // m) * m


def _is_skip_input(i):
    """True if trunk layer i consumes concat([x, inputs]) (PyTorch semantics)."""
    return i > 1 and (i - 1) % SKIP_INDEX == 0


def _default_epilogue_dtype():
    """bf16 bias/ReLU epilogue only where the VPU has bf16 VALUs (v6e / v7x)."""
    try:
        kind = jax.devices()[0].device_kind.lower()
    except Exception:
        return jnp.float32
    if ("v6" in kind) or ("v7" in kind) or ("tpu7" in kind) or ("7x" in kind):
        return jnp.bfloat16
    return jnp.float32


# ----------------------------- parameter init --------------------------------
def init_params(key):
    """Returns a list of (W [out, in], b [out]) f32 tuples (PyTorch layout)."""
    keys = iter(jax.random.split(key, 64))

    def layer(fan_in, fan_out):
        kw, kb = next(keys), next(keys)
        bound_w = (6.0 / (fan_in + fan_out)) ** 0.5  # xavier uniform
        w = jax.random.uniform(kw, (fan_out, fan_in), jnp.float32, -bound_w, bound_w)
        bound_b = 1.0 / (fan_in ** 0.5)              # nn.Linear default bias init
        b = jax.random.uniform(kb, (fan_out,), jnp.float32, -bound_b, bound_b)
        return (w, b)

    params = []
    for i in range(NET_DEPTH):
        if i == 0:
            dim_in = XYZ_DIM
        elif _is_skip_input(i):
            dim_in = NET_WIDTH + XYZ_DIM
        else:
            dim_in = NET_WIDTH
        params.append(layer(dim_in, NET_WIDTH))
    params.append(layer(NET_WIDTH, NUM_DENSITY_CHANNELS))   # density head
    params.append(layer(NET_WIDTH, NET_WIDTH))               # extra (bottleneck)
    for i in range(NET_DEPTH_CONDITION):
        dim_in = NET_WIDTH + VIEW_DIM if i == 0 else NET_WIDTH_CONDITION
        params.append(layer(dim_in, NET_WIDTH_CONDITION))
    params.append(layer(NET_WIDTH_CONDITION, NUM_RGB_CHANNELS))  # color head
    return params


# ------------------------------ parameter packing -----------------------------
def _pack_params(params):
    """Pack all weights into one bf16 [W_ROWS, 32] slab and all biases into one
    f32 [B_ROWS, 1] slab. Concat-consuming weights are pre-split (concat(a,b)@W
    == a@Wa + b@Wb), density + bottleneck heads are fused into one chunk.
    Returns (w_slab, b_slab, w_layout, b_layout) with static (offset, rows[, cols])
    tuples in kernel-consumption order. Row offsets are 16-aligned (bf16) /
    8-aligned (f32) so in-kernel static slices stay sublane-aligned."""
    w_chunks, b_chunks = [], []
    w_layout, b_layout = [], []
    wrow, brow = [0], [0]

    def add_w(w):
        out, cin = w.shape
        w_layout.append((wrow[0], out, cin))
        w_chunks.append((wrow[0], w))
        wrow[0] += _round_up(out, 16)

    def add_b(b):
        out = b.shape[0]
        b_layout.append((brow[0], out))
        b_chunks.append((brow[0], b))
        brow[0] += _round_up(out, 8)

    li = 0
    for i in range(NET_DEPTH):                 # trunk
        w, b = params[li]; li += 1
        if _is_skip_input(i):
            add_w(w[:, :NET_WIDTH]); add_w(w[:, NET_WIDTH:])
        else:
            add_w(w)
        add_b(b)
    wd, bd = params[li]; li += 1               # density head
    we, be = params[li]; li += 1               # extra / bottleneck
    add_w(jnp.concatenate([we, wd], axis=0))   # fused: rows 0..31 bottleneck, 32 density
    add_b(jnp.concatenate([be, bd], axis=0))
    for i in range(NET_DEPTH_CONDITION):       # view-conditioned
        w, b = params[li]; li += 1
        if i == 0:
            add_w(w[:, :NET_WIDTH]); add_w(w[:, NET_WIDTH:])
        else:
            add_w(w)
        add_b(b)
    wc, bc = params[li]; li += 1               # color head
    add_w(wc); add_b(bc)

    w_rows = _round_up(wrow[0], 16)
    b_rows = _round_up(brow[0], 8)
    w_slab = jnp.zeros((w_rows, W_PAD_COLS), jnp.bfloat16)
    for off, w in w_chunks:
        w_slab = w_slab.at[off:off + w.shape[0], :w.shape[1]].set(
            w.astype(jnp.bfloat16))
    b_slab = jnp.zeros((b_rows, 1), jnp.float32)
    for off, b in b_chunks:
        b_slab = b_slab.at[off:off + b.shape[0], 0].set(b)
    return w_slab, b_slab, tuple(w_layout), tuple(b_layout)


# ------------------------------- Pallas kernel --------------------------------
def _make_kernel(w_layout, b_layout, epilogue_dtype):
    bf16 = jnp.bfloat16
    use_bf16_epi = (jnp.dtype(epilogue_dtype) == jnp.dtype(bf16))

    def kernel(x_ref, view_ref, w_ref, b_ref, out_ref):
        w_idx, b_idx = [0], [0]

        def next_w():
            off, rows, cols = w_layout[w_idx[0]]; w_idx[0] += 1
            return w_ref[off:off + rows, :cols]          # static slice, resident

        def next_b():
            off, rows = b_layout[b_idx[0]]; b_idx[0] += 1
            return b_ref[off:off + rows, :]              # f32 [rows, 1]

        def as_bf16(v):
            return v if v.dtype == bf16 else v.astype(bf16)

        def activate(acc, b):                            # bias + ReLU epilogue
            if use_bf16_epi:
                return jnp.maximum(acc.astype(bf16) + b.astype(bf16), 0)
            return jnp.maximum(acc + b, 0.0)

        inputs = x_ref[...]      # bf16 [XYZ_DIM, R]   (rows on lanes)
        view = view_ref[...]     # bf16 [VIEW_DIM, R]

        # ---- trunk MLP with skip connections (concat realized via split dots) ----
        x = None
        for i in range(NET_DEPTH):
            if _is_skip_input(i):
                wa, wb = next_w(), next_w()
                acc = (jnp.dot(wa, as_bf16(x), preferred_element_type=jnp.float32)
                       + jnp.dot(wb, inputs, preferred_element_type=jnp.float32))
            else:
                w = next_w()
                op = inputs if i == 0 else as_bf16(x)
                acc = jnp.dot(w, op, preferred_element_type=jnp.float32)
            x = activate(acc, next_b())

        x_b = as_bf16(x)

        # ---- fused bottleneck + density head (single MXU dot, no activation) ----
        wf, bf_ = next_w(), next_b()
        fused = jnp.dot(wf, x_b, preferred_element_type=jnp.float32) + bf_
        bottleneck = as_bf16(fused[:NET_WIDTH, :])       # rows 0..31
        density = fused[NET_WIDTH:, :]                   # row 32, f32 [1, R]

        # ---- view-conditioned layers ----
        h = None
        for i in range(NET_DEPTH_CONDITION):
            if i == 0:
                wa, wb = next_w(), next_w()
                acc = (jnp.dot(wa, bottleneck, preferred_element_type=jnp.float32)
                       + jnp.dot(wb, view, preferred_element_type=jnp.float32))
            else:
                w = next_w()
                acc = jnp.dot(w, as_bf16(h), preferred_element_type=jnp.float32)
            h = activate(acc, next_b())

        # ---- color head ----
        wc, bc = next_w(), next_b()
        rgb = jnp.dot(wc, as_bf16(h), preferred_element_type=jnp.float32) + bc

        # single lane-dense store: [4, R] slab, rows 0..2 = rgb, row 3 = density
        out_ref[...] = jnp.concatenate([rgb, density], axis=0)

    return kernel


# --------------------------------- wrapper ------------------------------------
def mlp_forward(x, view_direction, params, tile_rows=TILE_ROWS, epilogue_dtype=None):
    """x: [batch, num_samples, xyz_dim]; view_direction: [batch, view_dim]."""
    if epilogue_dtype is None:
        epilogue_dtype = _default_epilogue_dtype()

    batch, num_samples, xyz_dim = x.shape
    view_dim = view_direction.shape[-1]
    n_rows = batch * num_samples

    # lane-dense tiling: rows -> lanes; clamp for tiny inputs, keep grid >= 2
    # when possible so the 'parallel' axis can shard across v7x's two cores.
    tile_rows = min(tile_rows, _round_up(n_rows, 128))
    if n_rows > 128 and _round_up(n_rows, tile_rows) // tile_rows < 2:
        tile_rows = _round_up(-(-n_rows // 2), 128)
    padded_rows = _round_up(n_rows, tile_rows)
    pad = padded_rows - n_rows

    # layout plumbing: transpose to [feature, rows], cast MXU operands to bf16 once.
    x_t = x.reshape(n_rows, xyz_dim).T.astype(jnp.bfloat16)
    view_t = jnp.broadcast_to(
        view_direction[:, None, :], (batch, num_samples, view_dim)
    ).reshape(n_rows, view_dim).T.astype(jnp.bfloat16)
    if pad:
        x_t = jnp.pad(x_t, ((0, 0), (0, pad)))
        view_t = jnp.pad(view_t, ((0, 0), (0, pad)))

    w_slab, b_slab, w_layout, b_layout = _pack_params(params)
    kernel = _make_kernel(w_layout, b_layout, epilogue_dtype)

    grid = (padded_rows // tile_rows,)
    row_spec = lambda feat: pl.BlockSpec((feat, tile_rows), lambda i: (0, i))
    full_spec = lambda arr: pl.BlockSpec(arr.shape, lambda i: (0, 0))

    out = pl.pallas_call(
        kernel,
        grid=grid,
        in_specs=[row_spec(xyz_dim), row_spec(view_dim),
                  full_spec(w_slab), full_spec(b_slab)],
        out_specs=row_spec(OUT_CHANNELS),
        out_shape=jax.ShapeDtypeStruct((OUT_CHANNELS, padded_rows), jnp.float32),
        compiler_params=pltpu.CompilerParams(
            dimension_semantics=("parallel",)),
    )(x_t, view_t, w_slab, b_slab)

    raw_rgb = out[:NUM_RGB_CHANNELS, :n_rows].T.reshape(
        batch, num_samples, NUM_RGB_CHANNELS)
    raw_density = out[NUM_RGB_CHANNELS:, :n_rows].T.reshape(
        batch, num_samples, NUM_DENSITY_CHANNELS)
    return raw_rgb, raw_density


# ----------------------------- pure-JAX reference -----------------------------
def mlp_reference(x, view_direction, params, epilogue_dtype=jnp.float32):
    """PyTorch-structure reference with the same numerics as the kernel:
    bf16 MXU operands, f32 accumulation, epilogue in `epilogue_dtype`."""
    batch, num_samples, _ = x.shape
    bf16 = jnp.bfloat16
    use_bf16_epi = (jnp.dtype(epilogue_dtype) == jnp.dtype(bf16))

    def dot_bf16(h, w):
        return jnp.dot(h.astype(bf16), w.T.astype(bf16),
                       preferred_element_type=jnp.float32)

    def act(acc, b):
        if use_bf16_epi:
            return jnp.maximum(acc.astype(bf16) + b.astype(bf16), 0)
        return jnp.maximum(acc + b, 0.0)

    li = 0
    inputs = x
    h = x
    for i in range(NET_DEPTH):
        w, b = params[li]; li += 1
        h = act(dot_bf16(h, w), b)
        if i % SKIP_INDEX == 0 and i > 0:
            h = jnp.concatenate([h.astype(jnp.float32), inputs], axis=-1)
    w, b = params[li]; li += 1
    raw_density = dot_bf16(h, w) + b
    w, b = params[li]; li += 1
    bottleneck = dot_bf16(h, w) + b
    view = jnp.broadcast_to(view_direction[:, None, :],
                            (batch, num_samples, view_direction.shape[-1]))
    h = jnp.concatenate([bottleneck, view], axis=-1)
    for i in range(NET_DEPTH_CONDITION):
        w, b = params[li]; li += 1
        h = act(dot_bf16(h, w), b)
    w, b = params[li]; li += 1
    raw_rgb = dot_bf16(h, w) + b
    return raw_rgb, raw_density


# ----------------------------------- main -------------------------------------
if __name__ == "__main__":
    key = jax.random.PRNGKey(0)
    k_params, k_x, k_view = jax.random.split(key, 3)

    params = init_params(k_params)
    x = jax.random.normal(k_x, (BATCH, NUM_SAMPLES, XYZ_DIM), jnp.float32)
    view_direction = jax.random.normal(k_view, (BATCH, VIEW_DIM), jnp.float32)

    epi_dtype = _default_epilogue_dtype()
    raw_rgb, raw_density = mlp_forward(x, view_direction, params,
                                       epilogue_dtype=epi_dtype)
    jax.block_until_ready((raw_rgb, raw_density))

    ref_rgb, ref_density = mlp_reference(x, view_direction, params,
                                         epilogue_dtype=epi_dtype)
    assert raw_rgb.shape == (BATCH, NUM_SAMPLES, NUM_RGB_CHANNELS)
    assert raw_density.shape == (BATCH, NUM_SAMPLES, NUM_DENSITY_CHANNELS)
    assert jnp.allclose(raw_rgb, ref_rgb, atol=1e-2, rtol=1e-2)
    assert jnp.allclose(raw_density, ref_density, atol=1e-2, rtol=1e-2)

    print("KERNEL_OK")
</pallas_src>

<mosaic_0001>
module attributes {stable_mosaic.version = 11 : i64} {
  func.func @kernel(%arg0: i32, %arg1: memref<16x128xbf16, #tpu.memory_space<vmem>>, %arg2: memref<8x128xbf16, #tpu.memory_space<vmem>>, %arg3: memref<256x32xbf16, #tpu.memory_space<vmem>>, %arg4: memref<192x1xf32, #tpu.memory_space<vmem>>, %arg5: memref<4x128xf32, #tpu.memory_space<vmem>>) attributes {dimension_semantics = [#tpu.dimension_semantics<parallel>], iteration_bounds = array<i64: 1>, scalar_prefetch = 0 : i64, scratch_operands = 0 : i64, tpu.core_type = #tpu.core_type<tc>, window_params = [{transform_indices = @transform_0, window_bounds = array<i64: 16, 128>}, {transform_indices = @transform_1, window_bounds = array<i64: 8, 128>}, {pipeline_mode = #tpu.pipeline_mode<synchronous>, transform_indices = @transform_2, window_bounds = array<i64: 256, 32>}, {pipeline_mode = #tpu.pipeline_mode<synchronous>, transform_indices = @transform_3, window_bounds = array<i64: 192, 1>}, {transform_indices = @transform_4, window_bounds = array<i64: 4, 128>}]} {
    %c0 = arith.constant 0 : index
    %c0_0 = arith.constant 0 : index
    %0 = vector.load %arg1[%c0, %c0_0] : memref<16x128xbf16, #tpu.memory_space<vmem>>, vector<16x128xbf16>
    %c0_1 = arith.constant 0 : index
    %c0_2 = arith.constant 0 : index
    %1 = vector.load %arg2[%c0_1, %c0_2] : memref<8x128xbf16, #tpu.memory_space<vmem>>, vector<8x128xbf16>
    %c0_3 = arith.constant 0 : index
    %c0_4 = arith.constant 0 : index
    %2 = vector.load %arg3[%c0_3, %c0_4] : memref<256x32xbf16, #tpu.memory_space<vmem>>, vector<32x16xbf16>
    %cst = arith.constant dense<0.000000e+00> : vector<32x128xf32>
    %3 = tpu.matmul %2, %0, %cst {dimension_numbers = #tpu.dot_dimension_numbers<[1], [0], [0], [1], [0, 0, 1, 1], [], []>} : vector<32x16xbf16>, vector<16x128xbf16>, vector<32x128xf32> -> vector<32x128xf32>
    %c0_5 = arith.constant 0 : index
    %c0_6 = arith.constant 0 : index
    %4 = vector.load %arg4[%c0_5, %c0_6] : memref<192x1xf32, #tpu.memory_space<vmem>>, vector<32x1xf32>
    %5 = vector.broadcast %4 : vector<32x1xf32> to vector<32x128xf32>
    %6 = arith.addf %3, %5 : vector<32x128xf32>
    %cst_7 = arith.constant 0.000000e+00 : f32
    %7 = vector.broadcast %cst_7 : f32 to vector<32x128xf32>
    %8 = arith.maximumf %6, %7 : vector<32x128xf32>
    %c32 = arith.constant 32 : index
    %c0_8 = arith.constant 0 : index
    %9 = vector.load %arg3[%c32, %c0_8] : memref<256x32xbf16, #tpu.memory_space<vmem>>, vector<32x32xbf16>
    %10 = arith.truncf %8 : vector<32x128xf32> to vector<32x128xbf16>
    %cst_9 = arith.constant dense<0.000000e+00> : vector<32x128xf32>
    %11 = tpu.matmul %9, %10, %cst_9 {dimension_numbers = #tpu.dot_dimension_numbers<[1], [0], [0], [1], [0, 0, 1, 1], [], []>} : vector<32x32xbf16>, vector<32x128xbf16>, vector<32x128xf32> -> vector<32x128xf32>
    %c32_10 = arith.constant 32 : index
    %c0_11 = arith.constant 0 : index
    %12 = vector.load %arg4[%c32_10, %c0_11] : memref<192x1xf32, #tpu.memory_space<vmem>>, vector<32x1xf32>
    %13 = vector.broadcast %12 : vector<32x1xf32> to vector<32x128xf32>
    %14 = arith.addf %11, %13 : vector<32x128xf32>
    %cst_12 = arith.constant 0.000000e+00 : f32
    %15 = vector.broadcast %cst_12 : f32 to vector<32x128xf32>
    %16 = arith.maximumf %14, %15 : vector<32x128xf32>
    %c64 = arith.constant 64 : index
    %c0_13 = arith.constant 0 : index
    %17 = vector.load %arg3[%c64, %c0_13] : memref<256x32xbf16, #tpu.memory_space<vmem>>, vector<32x32xbf16>
    %18 = arith.truncf %16 : vector<32x128xf32> to vector<32x128xbf16>
    %cst_14 = arith.constant dense<0.000000e+00> : vector<32x128xf32>
    %19 = tpu.matmul %17, %18, %cst_14 {dimension_numbers = #tpu.dot_dimension_numbers<[1], [0], [0], [1], [0, 0, 1, 1], [], []>} : vector<32x32xbf16>, vector<32x128xbf16>, vector<32x128xf32> -> vector<32x128xf32>
    %c64_15 = arith.constant 64 : index
    %c0_16 = arith.constant 0 : index
    %20 = vector.load %arg4[%c64_15, %c0_16] : memref<192x1xf32, #tpu.memory_space<vmem>>, vector<32x1xf32>
    %21 = vector.broadcast %20 : vector<32x1xf32> to vector<32x128xf32>
    %22 = arith.addf %19, %21 : vector<32x128xf32>
    %cst_17 = arith.constant 0.000000e+00 : f32
    %23 = vector.broadcast %cst_17 : f32 to vector<32x128xf32>
    %24 = arith.maximumf %22, %23 : vector<32x128xf32>
    %c96 = arith.constant 96 : index
    %c0_18 = arith.constant 0 : index
    %25 = vector.load %arg3[%c96, %c0_18] : memref<256x32xbf16, #tpu.memory_space<vmem>>, vector<32x32xbf16>
    %c128 = arith.constant 128 : index
    %c0_19 = arith.constant 0 : index
    %26 = vector.load %arg3[%c128, %c0_19] : memref<256x32xbf16, #tpu.memory_space<vmem>>, vector<32x16xbf16>
    %27 = arith.truncf %24 : vector<32x128xf32> to vector<32x128xbf16>
    %cst_20 = arith.constant dense<0.000000e+00> : vector<32x128xf32>
    %28 = tpu.matmul %25, %27, %cst_20 {dimension_numbers = #tpu.dot_dimension_numbers<[1], [0], [0], [1], [0, 0, 1, 1], [], []>} : vector<32x32xbf16>, vector<32x128xbf16>, vector<32x128xf32> -> vector<32x128xf32>
    %cst_21 = arith.constant dense<0.000000e+00> : vector<32x128xf32>
    %29 = tpu.matmul %26, %0, %cst_21 {dimension_numbers = #tpu.dot_dimension_numbers<[1], [0], [0], [1], [0, 0, 1, 1], [], []>} : vector<32x16xbf16>, vector<16x128xbf16>, vector<32x128xf32> -> vector<32x128xf32>
    %30 = arith.addf %28, %29 : vector<32x128xf32>
    %c96_22 = arith.constant 96 : index
    %c0_23 = arith.constant 0 : index
    %31 = vector.load %arg4[%c96_22, %c0_23] : memref<192x1xf32, #tpu.memory_space<vmem>>, vector<32x1xf32>
    %32 = vector.broadcast %31 : vector<32x1xf32> to vector<32x128xf32>
    %33 = arith.addf %30, %32 : vector<32x128xf32>
    %cst_24 = arith.constant 0.000000e+00 : f32
    %34 = vector.broadcast %cst_24 : f32 to vector<32x128xf32>
    %35 = arith.maximumf %33, %34 : vector<32x128xf32>
    %36 = arith.truncf %35 : vector<32x128xf32> to vector<32x128xbf16>
    %c160 = arith.constant 160 : index
    %c0_25 = arith.constant 0 : index
    %37 = vector.load %arg3[%c160, %c0_25] : memref<256x32xbf16, #tpu.memory_space<vmem>>, vector<33x32xbf16>
    %c128_26 = arith.constant 128 : index
    %c0_27 = arith.constant 0 : index
    %38 = vector.load %arg4[%c128_26, %c0_27] : memref<192x1xf32, #tpu.memory_space<vmem>>, vector<33x1xf32>
    %cst_28 = arith.constant dense<0.000000e+00> : vector<33x128xf32>
    %39 = tpu.matmul %37, %36, %cst_28 {dimension_numbers = #tpu.dot_dimension_numbers<[1], [0], [0], [1], [0, 0, 1, 1], [], []>} : vector<33x32xbf16>, vector<32x128xbf16>, vector<33x128xf32> -> vector<33x128xf32>
    %40 = vector.broadcast %38 : vector<33x1xf32> to vector<33x128xf32>
    %41 = arith.addf %39, %40 : vector<33x128xf32>
    %42 = vector.extract_strided_slice %41 {offsets = [0, 0], sizes = [32, 128], strides = [1, 1]} : vector<33x128xf32> to vector<32x128xf32>
    %43 = arith.truncf %42 : vector<32x128xf32> to vector<32x128xbf16>
    %44 = vector.extract_strided_slice %41 {offsets = [32, 0], sizes = [1, 128], strides = [1, 1]} : vector<33x128xf32> to vector<1x128xf32>
    %c208 = arith.constant 208 : index
    %c0_29 = arith.constant 0 : index
    %45 = vector.load %arg3[%c208, %c0_29] : memref<256x32xbf16, #tpu.memory_space<vmem>>, vector<16x32xbf16>
    %c224 = arith.constant 224 : index
    %c0_30 = arith.constant 0 : index
    %46 = vector.load %arg3[%c224, %c0_30] : memref<256x32xbf16, #tpu.memory_space<vmem>>, vector<16x8xbf16>
    %cst_31 = arith.constant dense<0.000000e+00> : vector<16x128xf32>
    %47 = tpu.matmul %45, %43, %cst_31 {dimension_numbers = #tpu.dot_dimension_numbers<[1], [0], [0], [1], [0, 0, 1, 1], [], []>} : vector<16x32xbf16>, vector<32x128xbf16>, vector<16x128xf32> -> vector<16x128xf32>
    %cst_32 = arith.constant dense<0.000000e+00> : vector<16x128xf32>
    %48 = tpu.matmul %46, %1, %cst_32 {dimension_numbers = #tpu.dot_dimension_numbers<[1], [0], [0], [1], [0, 0, 1, 1], [], []>} : vector<16x8xbf16>, vector<8x128xbf16>, vector<16x128xf32> -> vector<16x128xf32>
    %49 = arith.addf %47, %48 : vector<16x128xf32>
    %c168 = arith.constant 168 : index
    %c0_33 = arith.constant 0 : index
    %50 = vector.load %arg4[%c168, %c0_33] : memref<192x1xf32, #tpu.memory_space<vmem>>, vector<16x1xf32>
    %51 = vector.broadcast %50 : vector<16x1xf32> to vector<16x128xf32>
    %52 = arith.addf %49, %51 : vector<16x128xf32>
    %cst_34 = arith.constant 0.000000e+00 : f32
    %53 = vector.broadcast %cst_34 : f32 to vector<16x128xf32>
    %54 = arith.maximumf %52, %53 : vector<16x128xf32>
    %c240 = arith.constant 240 : index
    %c0_35 = arith.constant 0 : index
    %55 = vector.load %arg3[%c240, %c0_35] : memref<256x32xbf16, #tpu.memory_space<vmem>>, vector<3x16xbf16>
    %c184 = arith.constant 184 : index
    %c0_36 = arith.constant 0 : index
    %56 = vector.load %arg4[%c184, %c0_36] : memref<192x1xf32, #tpu.memory_space<vmem>>, vector<3x1xf32>
    %57 = arith.truncf %54 : vector<16x128xf32> to vector<16x128xbf16>
    %cst_37 = arith.constant dense<0.000000e+00> : vector<3x128xf32>
    %58 = tpu.matmul %55, %57, %cst_37 {dimension_numbers = #tpu.dot_dimension_numbers<[1], [0], [0], [1], [0, 0, 1, 1], [], []>} : vector<3x16xbf16>, vector<16x128xbf16>, vector<3x128xf32> -> vector<3x128xf32>
    %59 = vector.broadcast %56 : vector<3x1xf32> to vector<3x128xf32>
    %60 = arith.addf %58, %59 : vector<3x128xf32>
    %61 = tpu.concatenate %60, %44 in 0 : vector<3x128xf32>, vector<1x128xf32> -> vector<4x128xf32>
    %c0_38 = arith.constant 0 : index
    %c0_39 = arith.constant 0 : index
    %62 = vector.load %arg5[%c0_38, %c0_39] : memref<4x128xf32, #tpu.memory_space<vmem>>, vector<4x128xf32>
    tpu.vector_store %arg5[%c0_38, %c0_39], %61 {strides = array<i32>} : memref<4x128xf32, #tpu.memory_space<vmem>>, vector<4x128xf32>,
    return
  }
  func.func @transform_0(%arg0: i32) -> (i32, i32) {
    %c0_i32 = arith.constant 0 : i32
    %c0_i32_0 = arith.constant 0 : i32
    return %c0_i32, %arg0 : i32, i32
  }
  func.func @transform_1(%arg0: i32) -> (i32, i32) {
    %c0_i32 = arith.constant 0 : i32
    %c0_i32_0 = arith.constant 0 : i32
    return %c0_i32, %arg0 : i32, i32
  }
  func.func @transform_2(%arg0: i32) -> (i32, i32) {
    %c0_i32 = arith.constant 0 : i32
    %c0_i32_0 = arith.constant 0 : i32
    %c0_i32_1 = arith.constant 0 : i32
    return %c0_i32, %c0_i32_0 : i32, i32
  }
  func.func @transform_3(%arg0: i32) -> (i32, i32) {
    %c0_i32 = arith.constant 0 : i32
    %c0_i32_0 = arith.constant 0 : i32
    %c0_i32_1 = arith.constant 0 : i32
    return %c0_i32, %c0_i32_0 : i32, i32
  }
  func.func @transform_4(%arg0: i32) -> (i32, i32) {
    %c0_i32 = arith.constant 0 : i32
    %c0_i32_0 = arith.constant 0 : i32
    return %c0_i32, %arg0 : i32, i32
  }
}

</mosaic_0001>

<bundles_post_ra>
// kernel: tpu_custom_call.1
= control target key start
LH: loop header
LB: loop body
LE: loop exit
PB: predicated region body
PF: predicated region fallthrough
CT: control target
= control target key end

     0   :  { %vm66_vm0 = vcmask 130048   ;;  %v992_v3 = vmov 0   ;;  %s1186_s0 = inlined_call_operand.vmem [shape: bf16[16,128], index: 0, kind: input, shape index: {}]   ;;  %s1187_s1 = inlined_call_operand.vmem [shape: bf16[8,128], index: 1, kind: input, shape index: {}]   ;;  %s1188_s2 = inlined_call_operand.vmem [shape: bf16[256,32], index: 2, kind: input, shape index: {}]   ;;  %s1189_s3 = inlined_call_operand.vmem [shape: f32[192,1], index: 3, kind: input, shape index: {}]   ;;  %s1190_s4 = inlined_call_operand.hbm [shape: f32[4,128], index: 4, kind: output, shape index: {}]  }
   0x1   :  { %v1024_v0 = vld [vmem:[%s1186_s0] sm:$0xff]   ;;  %v954_v2 = vld [vmem:[%s1188_s2 + $0x8] sm:$0xff]   ;;  %950 = vset.pattern.permute.xlu0 %v992_v3  ;;  %v28_v5 = vld [vmem:[%s1189_s3 + $0x10] sm:$0xff]  ;;  %951 = vset.pattern.permute.xlu1 %v992_v3 }
   0x2   :  { %v953_v1 = vld [vmem:[%s1188_s2] sm:$0xff]   ;;  %870 = vmatprep.subr.bf16.mxu0 %v1024_v0  ;;  %42 = vperm.xlu1 %951, %v28_v5   ;;  %v27_v6 = vld [vmem:[%s1189_s3 + $0x8] sm:$0xff]  ;;  %v29_v7 = vld [vmem:[%s1189_s3 + $0x18] sm:$0xff] }
   0x3   :  { %871 = vmatpush3.bf16.msra.mxu0 %v1024_v0  ;;  %872 = vmatprep.mubr.msk.bf16.mxu0 %vm66_vm0, %v953_v1  ;;  %v26_v4 = vld [vmem:[%s1189_s3] sm:$0xff]  ;;  %v133_v9 = vld [vmem:[%s1189_s3 + $0x28] sm:$0xff]  ;;  %v134_v10 = vld [vmem:[%s1189_s3 + $0x30] sm:$0xff] }
   0x4   :  { %32 = vperm.xlu0 %950, %v26_v4   ;;  %v132_v8 = vld [vmem:[%s1189_s3 + $0x20] sm:$0xff]  ;;  %v135_v11 = vld [vmem:[%s1189_s3 + $0x38] sm:$0xff]  ;;  %v233_v13 = vld [vmem:[%s1189_s3 + $0x48] sm:$0xff] }
   0x5   :  { %v232_v12 = vld [vmem:[%s1189_s3 + $0x40] sm:$0xff] }
   0x6   :  { %873 = vmatmul.mubr.msk.bf16.vlgmr.msra.gmra.mrb[0].mxu0 %vm66_vm0, %v954_v2  ;;  %47 = vperm.xlu1 %951, %v29_v7  }
   0x8   :  { %37 = vperm.xlu0 %950, %v27_v6  }
   0xa   :  { %143 = vperm.xlu1 %951, %v133_v9  }
   0xc   :  { %138 = vperm.xlu0 %950, %v132_v8  }
   0xe   :  { %153 = vperm.xlu1 %951, %v135_v11  }
  0x10   :  { %148 = vperm.xlu0 %950, %v134_v10  }
  0x11   :  { %9 = vsyncpa [#allocation3], 0  ;;  %v234_v14 = vld [vmem:[%s1189_s3 + $0x50] sm:$0xff]  ;;  %v235_v15 = vld [vmem:[%s1189_s3 + $0x58] sm:$0xff]  ;;  %vm166_vm1 = vcmask 261120   ;;  %vm994_vm2 = vmmov 0  }
  0x12   :  { %243 = vperm.xlu1 %951, %v233_v13   ;;  %v465_v16 = vld [vmem:[%s1189_s3 + $0x60] sm:$0xff]  ;;  %v466_v17 = vld [vmem:[%s1189_s3 + $0x68] sm:$0xff]  ;;  %v467_v18 = vld [vmem:[%s1189_s3 + $0x70] sm:$0xff]  ;;  %vm627_vm3 = vcmask 1043456   ;;  %vm623_vm4 = vcmask 64512   ;;  %s995_s16 = smov [#allocation2]  }
  0x13   :  { %v468_v19 = vld [vmem:[%s1189_s3 + $0x78] sm:$0xff]  ;;  %v504_v20 = vld [vmem:[%s1189_s3 + $0x80] sm:$0xff]  ;;  %v505_v21 = vld [vmem:[%s1189_s3 + $0x88] sm:$0xff]  ;;  %vm791_vm5 = vcmask 1042432  }
  0x14   :  { %238 = vperm.xlu0 %950, %v232_v12   ;;  %v506_v22 = vld [vmem:[%s1189_s3 + $0x90] sm:$0xff]  ;;  %v507_v23 = vld [vmem:[%s1189_s3 + $0x98] sm:$0xff]  ;;  %v721_v24 = vld [vmem:[%s1189_s3 + $0xa8] sm:$0xff] }
  0x15   :  { %v722_v25 = vld [vmem:[%s1189_s3 + $0xb0] sm:$0xff]  ;;  %v508_v26 = vld [vmem:[%s1189_s3 + $0xa0] sm:$0x1]  ;;  %v738_v27 = vld [vmem:[%s1189_s3 + $0xb8] sm:$0x7]  ;;  %s800_s3 = sshll.u32 %s995_s16, 4  ;;  %s801_s3 = int_to_ptr.vmem [resolvable:$true] %s800_s3 }
  0x16   :  { %253 = vperm.xlu1 %951, %v235_v15   ;;  %v955_v28 = vld [vmem:[%s1188_s2 + $0x10] sm:$0xff]   ;;  %v956_v47 = vld [vmem:[%s1188_s2 + $0x18] sm:$0xff]   ;;  %v957_v48 = vld [vmem:[%s1188_s2 + $0x20] sm:$0xff]   ;;  %s968_s17 = scalar_lea.vmem %s801_s3, 64  ;;  %p973_p1 = scmp.lt.s32.totalorder %s801_s3, %s801_s3 }
  0x17   :  { %880 = vmatprep.mubr.msk.bf16.mxu1 %vm166_vm1, %v955_v28  ;;  %888 = vmatprep.mubr.msk.bf16.mxu0 %vm166_vm1, %v957_v48  ;;  %v958_v3 = vld [vmem:[%s1188_s2 + $0x28] sm:$0xff]   ;;  %v959_v4 = vld [vmem:[%s1188_s2 + $0x40] sm:$0xff]   ;;  %v961_v6 = vld [vmem:[%s1188_s2 + $0x30] sm:$0xff]   ;;  %p969_p0 = scmp.ne.s32.totalorder %s801_s3, %s968_s17  ;;  %p974_p2 = scmp.lt.s32.totalorder %s968_s17, %s968_s17 }
  0x18   :  { %248 = vperm.xlu0 %950, %v234_v14   ;;  %v960_v5 = vld [vmem:[%s1188_s2 + $0x48] sm:$0xff]   ;;  %v21_v48 = vld [vmem:[%s1187_s1] sm:$0xf] }
  0x19   :  { %p975_p3 = por %p974_p2, %p973_p1 }
  0x1a   :  { %476 = vperm.xlu1 %951, %v466_v17  }
  0x1b   :  { %p976_p4 = pnand %p975_p3, %p969_p0 }
  0x1c   :  { %471 = vperm.xlu0 %950, %v465_v16  }
  0x1e   :  { %486 = vperm.xlu1 %951, %v468_v19  }
  0x20   :  { %481 = vperm.xlu0 %950, %v467_v18  }
  0x22   :  { %516 = vperm.xlu1 %951, %v505_v21  }
  0x24   :  { %511 = vperm.xlu0 %950, %v504_v20  }
  0x26   :  { %526 = vperm.xlu1 %951, %v507_v23  }
  0x28   :  { %521 = vperm.xlu0 %950, %v506_v22  }
  0x2a   :  { %730 = vperm.xlu1 %951, %v722_v25   ;;  %v962_v25 = vld [vmem:[%s1188_s2 + $0x38] sm:$0xff]  }
  0x2c   :  { %725 = vperm.xlu0 %950, %v721_v24  }
  0x2e   :  { %742 = vperm.xlu1 %951, %v738_v27  }
  0x30   :  { %531 = vperm.xlu0 %950, %v508_v26   ;;  %v993_v26 = vmov 0.0  }
  0x81   :  { %v43_v29 = vpop.permute.xlu1 %42 }
  0x83   :  { %v33_v30 = vpop.permute.xlu0 %32 }
  0x85   :  { %v48_v34 = vpop.permute.xlu1 %47 }
  0x87   :  { %v38_v37 = vpop.permute.xlu0 %37 }
  0x89   :  { %v144_v50 = vpop.permute.xlu1 %143 }
  0x8b   :  { %v139_v49 = vpop.permute.xlu0 %138 }
  0x8d   :  { %v154_v55 = vpop.permute.xlu1 %153 }
  0x8f   :  { %v149_v51 = vpop.permute.xlu0 %148 }
  0x91   :  { %v244_v8 = vpop.permute.xlu1 %243 }
  0x93   :  { %v239_v7 = vpop.permute.xlu0 %238 }
  0x95   :  { %v254_v13 = vpop.permute.xlu1 %253 }
  0x97   :  { %v249_v9 = vpop.permute.xlu0 %248 }
  0x99   :  { %v477_v28 = vpop.permute.xlu1 %476 }
  0x9b   :  { %v472_v27 = vpop.permute.xlu0 %471 }
  0xd9   :  { %v874_v31 = vpop.f32.mrb[0].mxu0 }
  0xda   :  { %v116_v32 = vadd.f32 %v874_v31, %v43_v29  ;;  %v107_v33 = vpop.f32.mrb[1].mxu0  ;;  %v482_v29 = vpop.permute.xlu0 %481 }
  0xdb   :  { %v108_v35 = vadd.f32 %v107_v33, %v33_v30  ;;  %v875_v36 = vpop.f32.mrb[2].mxu0  ;;  %v487_v33 = vpop.permute.xlu1 %486 }
  0xdc   :  { %v119_v38 = vadd.f32 %v875_v36, %v48_v34  ;;  %v110_v39 = vpop.f32.mrb[3].mxu0  ;;  %v124_v41 = vmax.f32 %v116_v32, 0.0 }
  0xdd   :  { %v111_v40 = vadd.f32 %v110_v39, %v38_v37  ;;  %v122_v43 = vmax.f32 %v108_v35, 0.0 }
  0xde   :  { %v125_v42 = vmax.f32 %v119_v38, 0.0 }
  0xdf   :  { %v123_v44 = vmax.f32 %v111_v40, 0.0 }
  0xe0   :  { %v131_v45 = vpack.c.bf16 %v125_v42, %v124_v41 }
  0xe1   :  { %v130_v46 = vpack.c.bf16 %v123_v44, %v122_v43 }
  0xe3   :  { %876 = vmatprep.subr.bf16.mxu1 %v130_v46 }
  0xe4   :  { %877 = vmatpush3.bf16.msra.mxu1 %v130_v46  ;;  %v964_v46 = vld [vmem:[%s1188_s2 + $0x58] sm:$0xff]  }
  0xe5   :  { %878 = vmatprep.subr.bf16.mxu1 %v131_v45 }
  0xe8   :  { %879 = vmatpush3.bf16.msra.mxu1 %v131_v45  ;;  %v963_v45 = vld [vmem:[%s1188_s2 + $0x50] sm:$0xff]  }
  0xe9   :  { %892 = vmatprep.subr.bf16.mxu1 %v1024_v0 }
  0xeb   :  { %881 = vmatmul.mubr.msk.bf16.vlgmr.msra.gmra.mrb[0].mxu1 %vm166_vm1, %v956_v47  ;;  %v965_v47 = vld [vmem:[%s1188_s2 + $0x60] ss:$0 sps:$4 sm:$0x11]  }
  0xec   :  { %893 = vmatpush3.bf16.msra.mxu1 %v1024_v0  ;;  %894 = vmatprep.mubr.msk.bf16.mxu1 %vm66_vm0, %v959_v4 }
  0xf3   :  { %895 = vmatmul.mubr.msk.bf16.vlgmr.msra.gmra.mrb[4].mxu1 %vm66_vm0, %v960_v5  ;;  %v967_v5 = vld [vmem:[%s1188_s2 + $0x68] sm:$0xff]  }
  0xf4   :  { %902 = vmatprep.mubr.msk.bf16.mxu1 %vm166_vm1, %v961_v6 }
 0x1be   :  { %v882_v52 = vpop.f32.mrb[0].mxu1 }
 0x1bf   :  { %v216_v53 = vadd.f32 %v882_v52, %v149_v51  ;;  %v207_v54 = vpop.f32.mrb[1].mxu1  ;;  %v512_v52 = vpop.permute.xlu0 %511 }
 0x1c0   :  { %v208_v56 = vadd.f32 %v207_v54, %v139_v49  ;;  %v883_v57 = vpop.f32.mrb[2].mxu1  ;;  %v629_v49 = vsel %vm627_vm3, %v21_v48, 0  ;;  %v517_v54 = vpop.permute.xlu1 %516 }
 0x1c1   :  { %v219_v58 = vadd.f32 %v883_v57, %v154_v55  ;;  %v210_v59 = vpop.f32.mrb[3].mxu1  ;;  %v224_v61 = vmax.f32 %v216_v53, 0.0 }
 0x1c2   :  { %v211_v60 = vadd.f32 %v210_v59, %v144_v50  ;;  %v222_v63 = vmax.f32 %v208_v56, 0.0  ;;  %v966_v50 = vld [vmem:[%s1188_s2 + $0x70] sm:$0xff]  }
 0x1c3   :  { %v225_v62 = vmax.f32 %v219_v58, 0.0 }
 0x1c4   :  { %v223_v0 = vmax.f32 %v211_v60, 0.0 }
 0x1c5   :  { %v231_v1 = vpack.c.bf16 %v225_v62, %v224_v61  ;;  %v522_v61 = vpop.permute.xlu0 %521 }
 0x1c6   :  { %v230_v2 = vpack.c.bf16 %v223_v0, %v222_v63  ;;  %v527_v63 = vpop.permute.xlu1 %526 }
 0x1c8   :  { %884 = vmatprep.subr.bf16.mxu0 %v230_v2 }
 0x1c9   :  { %885 = vmatpush3.bf16.msra.mxu0 %v230_v2 }
 0x1ca   :  { %886 = vmatprep.subr.bf16.mxu0 %v231_v1 }
 0x1cd   :  { %887 = vmatpush3.bf16.msra.mxu0 %v231_v1 }
 0x1ce   :  { %906 = vmatprep.subr.bf16.mxu0 %v993_v26 }
 0x1d0   :  { %889 = vmatmul.mubr.msk.bf16.vlgmr.msra.gmra.mrb[4].mxu0 %vm166_vm1, %v958_v3 }
 0x1d1   :  { %910 = vmatprep.mubr.msk.bf16.mxu0 %vm994_vm2, %v993_v26 }
 0x2a3   :  { %v890_v10 = vpop.f32.mrb[4].mxu0 }
 0x2a4   :  { %v315_v11 = vadd.f32 %v890_v10, %v249_v9  ;;  %v306_v12 = vpop.f32.mrb[5].mxu0 }
 0x2a5   :  { %v307_v14 = vadd.f32 %v306_v12, %v239_v7  ;;  %v891_v15 = vpop.f32.mrb[6].mxu0 }
 0x2a6   :  { %v318_v16 = vadd.f32 %v891_v15, %v254_v13  ;;  %v309_v17 = vpop.f32.mrb[7].mxu0  ;;  %v323_v19 = vmax.f32 %v315_v11, 0.0 }
 0x2a7   :  { %v310_v18 = vadd.f32 %v309_v17, %v244_v8  ;;  %v321_v21 = vmax.f32 %v307_v14, 0.0  ;;  %v726_v17 = vpop.permute.xlu0 %725 }
 0x2a8   :  { %v324_v20 = vmax.f32 %v318_v16, 0.0 }
 0x2a9   :  { %v322_v22 = vmax.f32 %v310_v18, 0.0 }
 0x2aa   :  { %v334_v23 = vpack.c.bf16 %v324_v20, %v323_v19 }
 0x2ab   :  { %v333_v24 = vpack.c.bf16 %v322_v22, %v321_v21  ;;  %v731_v22 = vpop.permute.xlu1 %730 }
 0x2ad   :  { %898 = vmatprep.subr.bf16.mxu1 %v333_v24 }
 0x2ae   :  { %899 = vmatpush3.bf16.msra.mxu1 %v333_v24 }
 0x2af   :  { %900 = vmatprep.subr.bf16.mxu1 %v334_v23 }
 0x2b2   :  { %901 = vmatpush3.bf16.msra.mxu1 %v334_v23 }
 0x2b3   :  { %922 = vmatprep.subr.bf16.mxu1 %v993_v26 }
 0x2b5   :  { %903 = vmatmul.mubr.msk.bf16.vlgmr.msra.gmra.mrb[4].mxu1 %vm166_vm1, %v962_v25 }
 0x2b6   :  { %924 = vmatprep.mubr.msk.bf16.mxu1 %vm994_vm2, %v993_v26  ;;  %923 = vmatpush3.bf16.msra.mxu1 %v629_v49 }
 0x2b7   :  { %928 = vmatprep.subr.bf16.mxu1 %v993_v26 }
 0x2bd   :  { %925 = vmatmul.mubr.msk.bf16.vlgmr.msra.gmra.mrb[8].mxu1 %vm623_vm4, %v966_v50 }
 0x2be   :  { %932 = vmatprep.mubr.msk.bf16.mxu1 %vm994_vm2, %v993_v26 }
 0x388   :  { %v904_v30 = vpop.f32.mrb[4].mxu1 }
 0x389   :  { %v491_v31 = vadd.f32 %v904_v30, %v482_v29  ;;  %v450_v32 = vpop.f32.mrb[5].mxu1  ;;  %v743_v30 = vpop.permute.xlu1 %742 }
 0x38a   :  { %v489_v34 = vadd.f32 %v472_v27, %v450_v32  ;;  %v905_v35 = vpop.f32.mrb[6].mxu1  ;;  %v737_v27 = vld [vmem:[%s1188_s2 + $0x78] sm:$0x3] }
 0x38b   :  { %v492_v36 = vadd.f32 %v905_v35, %v487_v33  ;;  %v453_v37 = vpop.f32.mrb[7].mxu1  ;;  %v495_v39 = vmax.f32 %v491_v31, 0.0 }
 0x38c   :  { %v490_v38 = vadd.f32 %v477_v28, %v453_v37  ;;  %v493_v41 = vmax.f32 %v489_v34, 0.0  ;;  %v532_v28 = vpop.permute.xlu0 %531 }
 0x38d   :  { %v496_v40 = vmax.f32 %v492_v36, 0.0 }
 0x38e   :  { %v494_v42 = vmax.f32 %v490_v38, 0.0 }
 0x38f   :  { %v498_v43 = vpack.c.bf16 %v496_v40, %v495_v39 }
 0x390   :  { %v497_v44 = vpack.c.bf16 %v494_v42, %v493_v41  ;;  %v665_v10 = vpop.f32.mrb[8].mxu1 }
 0x391   :  { %v926_v11 = vpop.f32.mrb[9].mxu1 }
 0x392   :  { %907 = vmatpush3.bf16.msra.mxu0 %v497_v44  ;;  %v668_v12 = vpop.f32.mrb[10].mxu1 }
 0x393   :  { %908 = vmatprep.subr.bf16.mxu0 %v993_v26  ;;  %v927_v13 = vpop.f32.mrb[11].mxu1 }
 0x396   :  { %909 = vmatpush3.bf16.msra.mxu0 %v498_v43 }
 0x397   :  { %936 = vmatprep.subr.bf16.mxu0 %v993_v26 }
 0x399   :  { %911 = vmatmul.mubr.msk.bf16.vlgmr.msra.gmra.mrb[8].mxu0 %vm166_vm1, %v963_v45 }
 0x39a   :  { %914 = vmatprep.mubr.msk.bf16.mxu0 %vm994_vm2, %v993_v26 }
 0x3a1   :  { %915 = vmatmul.mubr.msk.bf16.gmra.mrb[12].mxu0 %vm166_vm1, %v964_v46 }
 0x3a2   :  { %918 = vmatprep.mubr.msk.bf16.mxu0 %vm994_vm2, %v993_v26 }
 0x3a9   :  { %919 = vmatmul.mubr.msk.bf16.gmra.mrb[16].mxu0 %vm166_vm1, %v965_v47 }
 0x3aa   :  { %938 = vmatprep.mubr.msk.bf16.mxu0 %vm994_vm2, %v993_v26 }
 0x46c   :  { %v590_v51 = vpop.f32.mrb[8].mxu0 }
 0x46d   :  { %v912_v53 = vpop.f32.mrb[9].mxu0  ;;  %v591_v56 = vadd.f32 %v590_v51, %v512_v52 }
 0x46e   :  { %v593_v55 = vpop.f32.mrb[10].mxu0 }
 0x46f   :  { %v594_v57 = vadd.f32 %v593_v55, %v517_v54  ;;  %v913_v58 = vpop.f32.mrb[11].mxu0 }
 0x471   :  { %v612_v59 = vpack.c.bf16 %v594_v57, %v591_v56 }
 0x473   :  { %929 = vmatpush3.bf16.msra.mxu1 %v612_v59 }
 0x474   :  { %v598_v60 = vpop.f32.mrb[12].mxu0  ;;  %930 = vmatprep.subr.bf16.mxu1 %v993_v26 }
 0x475   :  { %v916_v62 = vpop.f32.mrb[13].mxu0  ;;  %v599_v1 = vadd.f32 %v598_v60, %v522_v61 }
 0x476   :  { %v601_v0 = vpop.f32.mrb[14].mxu0 }
 0x477   :  { %v602_v2 = vadd.f32 %v601_v0, %v527_v63  ;;  %v917_v3 = vpop.f32.mrb[15].mxu0 }
 0x479   :  { %v613_v4 = vpack.c.bf16 %v602_v2, %v599_v1 }
 0x47b   :  { %931 = vmatpush3.bf16.msra.mxu1 %v613_v4 }
 0x47c   :  { %v606_v6 = vpop.f32.mrb[16].mxu0 }
 0x47d   :  { %v920_v7 = vpop.f32.mrb[17].mxu0  ;;  %v607_v29 = vadd.f32 %v606_v6, %v532_v28 }
 0x47e   :  { %933 = vmatmul.mubr.msk.bf16.vlgmr.msra.gmra.mrb[12].mxu1 %vm166_vm1, %v967_v5  ;;  %v609_v8 = vpop.f32.mrb[18].mxu0 }
 0x47f   :  { %v921_v9 = vpop.f32.mrb[19].mxu0  ;;  %v789_v32 = vrot.slane %v607_v29, 5 }
 0x551   :  { %v714_v14 = vpop.f32.mrb[12].mxu1 }
 0x552   :  { %v715_v15 = vadd.f32 %v714_v14, %v665_v10  ;;  %v934_v16 = vpop.f32.mrb[13].mxu1 }
 0x553   :  { %v717_v18 = vpop.f32.mrb[14].mxu1 }
 0x554   :  { %v733_v19 = vadd.f32 %v726_v17, %v715_v15  ;;  %v718_v20 = vadd.f32 %v717_v18, %v668_v12  ;;  %v935_v21 = vpop.f32.mrb[15].mxu1 }
 0x556   :  { %v734_v23 = vadd.f32 %v731_v22, %v718_v20  ;;  %v735_v24 = vmax.f32 %v733_v19, 0.0 }
 0x558   :  { %v736_v25 = vmax.f32 %v734_v23, 0.0 }
 0x55a   :  { %v739_v26 = vpack.c.bf16 %v736_v25, %v735_v24 }
 0x55c   :  { %937 = vmatpush3.bf16.msra.mxu0 %v739_v26 }
 0x55f   :  { %939 = vmatmul.mubr.msk.bf16.vlgmr.msra.gmra.mrb[20].mxu0 %vm66_vm0, %v737_v27 }
 0x632   :  { %v782_v31 = vpop.f32.mrb[20].mxu0 }
 0x633   :  { %v783_v33 = vadd.f32 %v782_v31, %v743_v30  ;;  %v940_v34 = vpop.f32.mrb[21].mxu0 }
 0x634   :  { %v785_v35 = vpop.f32.mrb[22].mxu0 }
 0x635   :  { %v941_v36 = vpop.f32.mrb[23].mxu0  ;;  %v792_v37 = vsel %vm791_vm5, %v783_v33, %v789_v32 }
 0x636   :  { %793 = vst [vmem:[#allocation2] sm:$0xf] %v792_v37 }
 0x637   :  { %979 = shalt.err (!%p976_p4)
}
 0x638   :  { %s980_s19 = scalar_lea.hbm %s1190_s4, 64 }
 0x639   :  { %p981_p5 = scmp.ne.s32.totalorder %s1190_s4, %s980_s19  ;;  %p984_p6 = scmp.lt.u32.totalorder %s980_s19, %s1190_s4 }
 0x63b   :  { %p986_p7 = pnand %p984_p6, %p981_p5 }
 0x63d   :  { %989 = shalt.err (!%p986_p7)
}
 0x63e   :  { %803 = dma.vmem_to_hbm [thread:$0]  %s801_s3, 64, %s1190_s4, [#allocation3]  }
 0x63f   :  { %990 = dma.done.wait [#allocation3], 64  }
 0x640   :  { %991 = vsyncadd [#allocation3], 4294967232 }
 0x641   :  { %807 = vsyncpa [#allocation3], 1 }

</bundles_post_ra>
